<compile_context>
chip_gen: v6e
topology: v6e:2x2x1
jax: 0.10.0
libtpu: 0.0.40
codegen_flags: <defaults>
</compile_context>

<pallas_src>
import functools

import jax
import jax.numpy as jnp
from jax import lax
from jax.experimental import pallas as pl
from jax.experimental.pallas import tpu as pltpu


def _pool_partial_kernel(x_ref, part_ref, acc_ref, *, hw, hw_tile,
                         tiles_per_split):
    # x_ref:    (B, C, hw_tile)  natural-layout activation tile (HW on lanes)
    # part_ref: (1, B, C) f32    per-split partial spatial sum (output)
    # acc_ref:  (B, C)    f32    running spatial sum for this split (scratch)
    s = pl.program_id(0)          # HW split (sharded across TCs on v7x)
    t = pl.program_id(1)          # tile within this split (sequential)

    @pl.when(t == 0)
    def _():
        acc_ref[...] = jnp.zeros_like(acc_ref)

    # Global tile index + lane positions.  The mask handles both the ragged
    # tail of HW and duplicate (clamped) tiles when n_tiles is odd, so no
    # wrapper-side jnp.pad of x is needed.
    g = s * tiles_per_split + t
    pos = g * hw_tile + lax.broadcasted_iota(jnp.int32, (1, 1, hw_tile), 2)
    xf = jnp.where(pos < hw, x_ref[...].astype(jnp.float32), 0.0)
    # TODO(synk): could keep a (B, C, 128) wide partial and defer the
    # cross-lane reduce to the epilogue; not needed while HBM-bound.
    acc_ref[...] += jnp.sum(xf, axis=-1)                      # -> (B, C)

    @pl.when(t == tiles_per_split - 1)
    def _():
        part_ref[0] = acc_ref[...]


def _scale_kernel(gate_ref, x_ref, o_ref):
    # gate_ref: (B, C)            constant block index -> resident, fetched once
    # x_ref:    (B, C, hw_tile)
    # o_ref:    (B, C, hw_tile) = x * gate (lane-broadcast over HW)
    g = gate_ref[...]
    o_ref[...] = (x_ref[...] * g[:, :, None]).astype(o_ref.dtype)


def se_block(x, w_down, b_down, w_up, b_up, *, hw_tile=None,
             tile_budget_bytes=4 * 1024 * 1024):
    """x: (B, C, H, W) NCHW. w_down: (Ci, C, 1, 1), b_down: (Ci,),
    w_up: (C, Ci, 1, 1), b_up: (C,). Returns (B, C, H, W)."""
    B, C, H, W = x.shape
    Ci = w_down.shape[0]
    HW = H * W
    # Global avg pool semantics of the PyTorch module only hold when H == W.
    assert H == W, "SEBlock kernel assumes square spatial dims (global pool)"

    x3 = x.reshape(B, C, HW)                     # free view, no transpose/copy
    itemsize = jnp.dtype(x.dtype).itemsize

    # HW sits on the 128-lane axis -> tiles are multiples of 128.
    if hw_tile is None:
        hw_tile = tile_budget_bytes // max(1, B * C * itemsize)
    hw_tile = (max(hw_tile, 128) // 128) * 128
    hw_tile = min(hw_tile, ((HW + 127) // 128) * 128)          # no oversize tile
    # Cap the per-tile footprint so pass 2's double-buffered in+out (~4x tile)
    # stays comfortably inside every generation's VMEM (v7x: 64 MiB physical).
    max_tile_bytes = 12 * 1024 * 1024
    hw_tile = min(hw_tile,
                  max(128, (max_tile_bytes // max(1, B * C * itemsize))
                      // 128 * 128))

    n_tiles = pl.cdiv(HW, hw_tile)
    n_splits = 2 if n_tiles >= 2 else 1          # shard pooling across v7x TCs
    tiles_per_split = pl.cdiv(n_tiles, n_splits)

    tile_bytes = B * C * hw_tile * itemsize
    # Pass 2 holds ~2x(in)+2x(out) tiles + the resident gate.
    vmem_limit = int(min(max(4 * tile_bytes + (4 << 20), 16 << 20), 56 << 20))

    # ---- Pass 1: streamed global-average-pool (per-split partial sums). ----
    def _x_map(s, t):
        g = s * tiles_per_split + t
        return (0, 0, jnp.minimum(g, n_tiles - 1))   # clamp; dup tiles masked

    partials = pl.pallas_call(
        functools.partial(_pool_partial_kernel, hw=HW, hw_tile=hw_tile,
                          tiles_per_split=tiles_per_split),
        out_shape=jax.ShapeDtypeStruct((n_splits, B, C), jnp.float32),
        grid=(n_splits, tiles_per_split),
        in_specs=[pl.BlockSpec((B, C, hw_tile), _x_map)],
        out_specs=pl.BlockSpec((1, B, C), lambda s, t: (s, 0, 0)),
        scratch_shapes=[pltpu.VMEM((B, C), jnp.float32)],
        compiler_params=pltpu.CompilerParams(
            dimension_semantics=("parallel", "arbitrary"),
            vmem_limit_bytes=vmem_limit),
    )(x3)

    # ---- Combine partials + tiny gate MLP (runs once on a (B, C) vector; ----
    # ---- far below MXU tile size, so plain XLA is the right tool here).  ----
    pooled = jnp.sum(partials, axis=0) * (1.0 / HW)            # (B, C) f32
    wd_t = w_down.reshape(Ci, C).T.astype(jnp.float32)         # (C, Ci)
    wu_t = w_up.reshape(C, Ci).T.astype(jnp.float32)           # (Ci, C)
    h = jnp.maximum(pooled @ wd_t + b_down.astype(jnp.float32), 0.0)
    gate = jax.nn.sigmoid(h @ wu_t + b_up.astype(jnp.float32))  # (B, C) f32
    if x.dtype == jnp.bfloat16:
        gate = gate.astype(jnp.bfloat16)   # multiply in bf16 (result is bf16)

    # ---- Pass 2: streamed channel-wise scaling (independent, lane-dense). ----
    out3 = pl.pallas_call(
        _scale_kernel,
        out_shape=jax.ShapeDtypeStruct((B, C, HW), x.dtype),
        grid=(n_tiles,),
        in_specs=[
            pl.BlockSpec((B, C), lambda t: (0, 0)),            # gate (resident)
            pl.BlockSpec((B, C, hw_tile), lambda t: (0, 0, t)),
        ],
        out_specs=pl.BlockSpec((B, C, hw_tile), lambda t: (0, 0, t)),
        compiler_params=pltpu.CompilerParams(
            dimension_semantics=("parallel",),                 # megacore-shardable
            vmem_limit_bytes=vmem_limit),
    )(gate, x3)

    return out3.reshape(B, C, H, W)              # free view back to NCHW


def _reference(x, w_down, b_down, w_up, b_up):
    B, C, H, W = x.shape
    Ci = w_down.shape[0]
    pooled = jnp.mean(x.astype(jnp.float32), axis=(2, 3))          # (B, C)
    h = jnp.maximum(pooled @ w_down.reshape(Ci, C).T + b_down, 0.0)
    s = jax.nn.sigmoid(h @ w_up.reshape(C, Ci).T + b_up)
    return (x.astype(jnp.float32) * s[:, :, None, None]).astype(x.dtype)


def _run_case(key, B, C, H, W, dtype, hw_tile):
    Ci = max(1, C // 8)
    kx, kwd, kbd, kwu, kbu = jax.random.split(key, 5)
    x = jax.random.normal(kx, (B, C, H, W), dtype=jnp.float32).astype(dtype)
    w_down = 0.1 * jax.random.normal(kwd, (Ci, C, 1, 1), dtype=jnp.float32)
    b_down = 0.1 * jax.random.normal(kbd, (Ci,), dtype=jnp.float32)
    w_up = 0.1 * jax.random.normal(kwu, (C, Ci, 1, 1), dtype=jnp.float32)
    b_up = 0.1 * jax.random.normal(kbu, (C,), dtype=jnp.float32)

    out = se_block(x, w_down, b_down, w_up, b_up, hw_tile=hw_tile)
    out = jax.block_until_ready(out)
    ref = _reference(x, w_down, b_down, w_up, b_up)
    tol = 1e-5 if dtype == jnp.float32 else 5e-2
    assert jnp.allclose(out.astype(jnp.float32), ref.astype(jnp.float32),
                        atol=tol, rtol=tol), \
        f"mismatch vs reference for shape {(B, C, H, W)} dtype {dtype}"


if __name__ == "__main__":
    key = jax.random.PRNGKey(0)
    k1, k2, k3, k4 = jax.random.split(key, 4)

    # Even multi-tile split across the two v7x TCs (n_tiles=2).
    _run_case(k1, B=2, C=16, H=16, W=16, dtype=jnp.float32, hw_tile=128)
    # Ragged HW tail handled in-kernel via iota masking (HW=144, tile=128).
    _run_case(k2, B=2, C=16, H=12, W=12, dtype=jnp.float32, hw_tile=128)
    # Odd tile count (n_tiles=5, splits=2): exercises clamped duplicate tile.
    _run_case(k3, B=2, C=16, H=24, W=24, dtype=jnp.float32, hw_tile=128)
    # bf16 path (single auto-sized tile; gate cast + bf16 multiply).
    _run_case(k4, B=2, C=16, H=16, W=16, dtype=jnp.bfloat16, hw_tile=None)

    print("KERNEL_OK")
</pallas_src>

<mosaic_0001>
module attributes {stable_mosaic.version = 11 : i64} {
  func.func @_pool_partial_kernel(%arg0: i32, %arg1: i32, %arg2: memref<2x16x128xf32, #tpu.memory_space<vmem>>, %arg3: memref<1x2x16xf32, #tpu.memory_space<vmem>>, %arg4: memref<2x16xf32, #tpu.memory_space<vmem>>) attributes {dimension_semantics = [#tpu.dimension_semantics<parallel>, #tpu.dimension_semantics<arbitrary>], iteration_bounds = array<i64: 2, 1>, scalar_prefetch = 0 : i64, scratch_operands = 1 : i64, tpu.core_type = #tpu.core_type<tc>, window_params = [{transform_indices = @transform_0, window_bounds = array<i64: 2, 16, 128>}, {transform_indices = @transform_1, window_bounds = array<i64: 1, 2, 16>}]} {
    %c0_i32 = arith.constant 0 : i32
    %0 = arith.cmpi eq, %arg1, %c0_i32 : i32
    %1 = arith.extui %0 : i1 to i32
    %c0_i32_0 = arith.constant 0 : i32
    %2 = arith.cmpi ne, %1, %c0_i32_0 : i32
    scf.if %2 {
      %cst_10 = arith.constant 0.000000e+00 : f32
      %23 = vector.broadcast %cst_10 : f32 to vector<2x16xf32>
      %c0_11 = arith.constant 0 : index
      %c0_12 = arith.constant 0 : index
      %24 = vector.load %arg4[%c0_11, %c0_12] : memref<2x16xf32, #tpu.memory_space<vmem>>, vector<2x16xf32>
      tpu.vector_store %arg4[%c0_11, %c0_12], %23 {strides = array<i32>} : memref<2x16xf32, #tpu.memory_space<vmem>>, vector<2x16xf32>,
    } else {
    }
    %c1_i32 = arith.constant 1 : i32
    %3 = arith.muli %arg0, %c1_i32 : i32
    %4 = arith.addi %3, %arg1 : i32
    %c128_i32 = arith.constant 128 : i32
    %5 = arith.muli %4, %c128_i32 : i32
    %6 = tpu.iota {dimensions = array<i32: 2>} : vector<1x1x128xi32>
    %7 = vector.broadcast %5 : i32 to vector<1x1x128xi32>
    %8 = arith.addi %7, %6 : vector<1x1x128xi32>
    %c256_i32 = arith.constant 256 : i32
    %9 = vector.broadcast %c256_i32 : i32 to vector<1x1x128xi32>
    %10 = arith.cmpi slt, %8, %9 : vector<1x1x128xi32>
    %c0 = arith.constant 0 : index
    %c0_1 = arith.constant 0 : index
    %c0_2 = arith.constant 0 : index
    %11 = vector.load %arg2[%c0, %c0_1, %c0_2] : memref<2x16x128xf32, #tpu.memory_space<vmem>>, vector<2x16x128xf32>
    %cst = arith.constant 0.000000e+00 : f32
    %12 = vector.shape_cast %10 : vector<1x1x128xi1> to vector<1x1x128xi1>
    %13 = vector.broadcast %12 : vector<1x1x128xi1> to vector<2x16x128xi1>
    %14 = vector.broadcast %cst : f32 to vector<2x16x128xf32>
    %15 = arith.select %13, %11, %14 : vector<2x16x128xi1>, vector<2x16x128xf32>
    %c0_3 = arith.constant 0 : index
    %c0_4 = arith.constant 0 : index
    %16 = vector.load %arg4[%c0_3, %c0_4] : memref<2x16xf32, #tpu.memory_space<vmem>>, vector<2x16xf32>
    %cst_5 = arith.constant dense<0.000000e+00> : vector<2x16xf32>
    %17 = vector.multi_reduction <add>, %15, %cst_5 [2] : vector<2x16x128xf32> to vector<2x16xf32>
    %18 = arith.addf %16, %17 : vector<2x16xf32>
    %c0_6 = arith.constant 0 : index
    %c0_7 = arith.constant 0 : index
    %19 = vector.load %arg4[%c0_6, %c0_7] : memref<2x16xf32, #tpu.memory_space<vmem>>, vector<2x16xf32>
    tpu.vector_store %arg4[%c0_6, %c0_7], %18 {strides = array<i32>} : memref<2x16xf32, #tpu.memory_space<vmem>>, vector<2x16xf32>,
    %c0_i32_8 = arith.constant 0 : i32
    %20 = arith.cmpi eq, %arg1, %c0_i32_8 : i32
    %21 = arith.extui %20 : i1 to i32
    %c0_i32_9 = arith.constant 0 : i32
    %22 = arith.cmpi ne, %21, %c0_i32_9 : i32
    scf.if %22 {
      %c0_10 = arith.constant 0 : index
      %c0_11 = arith.constant 0 : index
      %23 = vector.load %arg4[%c0_10, %c0_11] : memref<2x16xf32, #tpu.memory_space<vmem>>, vector<2x16xf32>
      %c0_12 = arith.constant 0 : index
      %c0_13 = arith.constant 0 : index
      %c0_14 = arith.constant 0 : index
      %24 = vector.load %arg3[%c0_12, %c0_13, %c0_14] : memref<1x2x16xf32, #tpu.memory_space<vmem>>, vector<1x2x16xf32>
      %25 = vector.shape_cast %24 : vector<1x2x16xf32> to vector<2x16xf32>
      %26 = vector.shape_cast %23 : vector<2x16xf32> to vector<1x2x16xf32>
      tpu.vector_store %arg3[%c0_12, %c0_13, %c0_14], %26 {strides = array<i32>} : memref<1x2x16xf32, #tpu.memory_space<vmem>>, vector<1x2x16xf32>,
    } else {
    }
    return
  }
  func.func @transform_0(%arg0: i32, %arg1: i32) -> (i32, i32, i32) {
    %c1_i32 = arith.constant 1 : i32
    %0 = arith.muli %arg0, %c1_i32 : i32
    %1 = arith.addi %0, %arg1 : i32
    %c1_i32_0 = arith.constant 1 : i32
    %2 = arith.minsi %1, %c1_i32_0 : i32
    %c0_i32 = arith.constant 0 : i32
    %c0_i32_1 = arith.constant 0 : i32
    %c0_i32_2 = arith.constant 0 : i32
    return %c0_i32, %c0_i32_1, %2 : i32, i32, i32
  }
  func.func @transform_1(%arg0: i32, %arg1: i32) -> (i32, i32, i32) {
    %c0_i32 = arith.constant 0 : i32
    %c0_i32_0 = arith.constant 0 : i32
    %c0_i32_1 = arith.constant 0 : i32
    return %arg0, %c0_i32, %c0_i32_0 : i32, i32, i32
  }
}

</mosaic_0001>

<bundles_post_ra>
// kernel: tpu_custom_call.1
= control target key start
LH: loop header
LB: loop body
LE: loop exit
PB: predicated region body
PF: predicated region fallthrough
CT: control target
= control target key end

     0   :  { %6 = vsyncpa [#allocation4], 0  ;;  %s745_s0 = inlined_call_operand.hbm [shape: f32[2,16,256], index: 0, kind: input, shape index: {}]   ;;  %s746_s1 = inlined_call_operand.hbm [shape: f32[2,2,16], index: 1, kind: output, shape index: {}]  }
   0x1   :  { %8 = vsyncpa [#allocation4 + $0x1], 0 }
   0x2   :  { %9 = vsyncpa [#allocation5], 0 }
   0x3   :  { %11 = vsyncpa [#allocation5 + $0x1], 0  ;;  %s571_s6 = smov 0   ;;  %s573_s7 = smov 0  }
   0x4   :  { %s575_s8 = smov 0   ;;  %s577_s9 = smov 0  }
   0x5   :  { %s579_s10 = smov 0   ;;  %s581_s11 = smov 0  }
   0x6   :  { %s583_s12 = smov 0   ;;  %s585_s13 = smov 0  }
   0x7   :  { %s587_s14 = smov 0  }
   0x8 LB: > { %s317_s15 = sadd.s32 4294967295, %s553_s14   ;;  %s318_s16 = sadd.s32 4294967294, %s553_s14   ;;  %s553_s14 = sphi %s587_s14, %s17_s14   ;;  %s549_s13 = sphi %s585_s13, %s760_s13   ;;  %s545_s12 = sphi %s583_s12, %s759_s12   ;;  %s541_s11 = sphi %s581_s11, %s758_s11   ;;  %s537_s10 = sphi %s579_s10, %s757_s10   ;;  %s533_s9 = sphi %s577_s9, %s756_s9   ;;  %s529_s8 = sphi %s575_s8, %s755_s8   ;;  %s525_s7 = sphi %s573_s7, %s754_s7   ;;  %s521_s6 = sphi %s571_s6, %s753_s6  }
   0x9   : > { %s29_s17 = sadd.s32 1, %s549_s13  ;;  %p34_p0 = scmp.lt.s32.totalorder %s549_s13, 1 }
   0xa   : > { %p31_p1 = scmp.ge.s32.totalorder %s29_s17, 2  ;;  %s42_s18 = sadd.s32 1, %s541_s11 }
   0xb   : > { %s620_s19 = scalar_select %p34_p0, %s549_s13, 1 }
   0xc   : > { %s762_s17 = smov (%p31_p1, %s29_s17), 0  ;;  %p49_p2 = scmp.ne.s32.totalorder %s541_s11, %s537_s10 }
   0xd   : > { %p50_p3 = scmp.eq.s32.totalorder %s553_s14, 0  ;;  %p37_p4 = scmp.lt.s32.totalorder %s762_s17, 1 }
   0xe   : > { %p55_p5 = scmp.ne.s32.totalorder %s537_s10, %s533_s9  ;;  %p56_p7 = scmp.eq.s32.totalorder %s317_s15, 0 }
   0xf   : > { %p629_p6 = por %p50_p3, %p49_p2  ;;  %s65_s23 = ssub.s32 %s549_s13, %s762_s17 }
  0x10   : > { %s38_s21 = scalar_select %p37_p4, %s762_s17, 1 }
  0x11   : > { %p634_p8 = por %p56_p7, %p55_p5  ;;  %p66_p9 = scmp.eq.s32.totalorder %s65_s23, 0 }
  0x12   : > { %s39_s24 = ssub.s32 %s620_s19, %s38_s21  ;;  %s68_s25 = sadd.s32 1, %s529_s8 }
  0x13   : > { %p40_p10 = scmp.eq.s32.totalorder %s39_s24, 0  ;;  %p78_p11 = scmp.ne.s32.totalorder %s529_s8, %s525_s7 }
  0x14   : > { %s643_s26 = scalar_select %p66_p9, %s529_s8, %s68_s25  }
  0x15   : > { %s646_s27 = scalar_select %p40_p10, %s541_s11, %s42_s18  }
  0x16   : > { %p79_p12 = scmp.eq.s32.totalorder %s317_s15, 1  ;;  %p84_p13 = scmp.ne.s32.totalorder %s525_s7, %s521_s6 }
  0x17   : > { %p85_p0 = scmp.eq.s32.totalorder %s318_s16, 1  ;;  %p343_p4 = scmp.lt.s32.totalorder %s553_s14, 2 }
  0x18   : > { %p652_p1 = por %p79_p12, %p78_p11  ;;  %s105_s30 = sand.u32 1, %s541_s11  }
  0x19   : > { %p657_p3 = por %p85_p0, %p84_p13  ;;  %s322_s2 = sshll.u32 %s620_s19, 7 }
  0x1a   : > { %s321_s3 = sshll.u32 %s105_s30, 5  ;;  %s117_s9 = scalar_lea.hbm %s745_s0, %s322_s2 }
  0x1b   : > { %s109_s15 = scalar_lea.vmem [#allocation3], %s321_s3  ;;  %p669_p5 = pnand %p343_p4, %p629_p6 }
  0x1c   : > { %s118_s18 = sshll.u32 %s109_s15, 4  ;;  %p323_p7 = scmp.ge.s32.totalorder %s553_s14, 1  ;;  %s119_s18 = int_to_ptr.vmem [resolvable:$true] %s118_s18 }
  0x1d   : > { %s106_s21 = scalar_lea.sflag [#allocation4], %s105_s30  ;;  %p423_p9 = pneg %p669_p5 }
  0x1e   : > { %s434_s23 = scalar_lea.vmem %s119_s18, 512  ;;  %s555_s19 = smov [#allocation3]  }
  0x1f   : > { %p435_p10 = scmp.ne.s32.totalorder %s119_s18, %s434_s23  ;;  %s439_s24 = sshll.u32 %s555_s19, 4  ;;  %s440_s24 = int_to_ptr.vmem [resolvable:$false] %s439_s24 }
  0x20   : > { %s441_s25 = scalar_lea.vmem %s440_s24, 1024  ;;  %p442_p13 = scmp.lt.s32.totalorder %s119_s18, %s440_s24 }
  0x21   : > { %p437_p11 = pnand %p435_p10, %p423_p9  ;;  %p443_p0 = scmp.lt.s32.totalorder %s441_s25, %s434_s23 }
  0x23   : > { %p438_p12 = pneg %p437_p11  ;;  %p444_p6 = por %p443_p0, %p442_p13 }
  0x25   : > { %p445_p4 = pnand %p444_p6, %p438_p12 }
  0x27   : > { %448 = shalt.err (!%p445_p4)
}
  0x28   : > { %s556_s20 = smov 256   ;;  %s557_s30 = smov 128  }
  0x29   : > { %s558_s2 = smov 8   ;;  %p126_p2 = scmp.lt.s32.totalorder %s553_s14, 3 }
  0x2a   : > { %338 = dma.hbm_to_vmem [thread:$0]  (!%p669_p5), %s117_s9, 512, %s119_s18, %s106_s21, %s556_s20, %s557_s30, %s558_s2  }
  0x2b   : > { %p127_p9 = pnand %p323_p7, %p126_p2 }
  0x2c   : > { %s132_s3 = sand.u32 (!%p127_p9), 1, %s537_s10  }
  0x2d   : > { %130 = sbr.rel (%p127_p9) target bundleno = 228 (0xe4), region = 24  ;;  %s324_s4 = sshll.u32 (!%p127_p9), %s132_s3, 5 }
  0x2e   : > { %s133_s5 = scalar_lea.sflag (!%p127_p9), [#allocation4], %s132_s3  ;;  %s136_s15 = scalar_lea.vmem (!%p127_p9), [#allocation3], %s324_s4 }
  0x32   : > { %512 = dma.done.wait (%p634_p8), %s133_s5, 512  }
  0x33   : > { %514 = vsyncadd (%p634_p8), %s133_s5, 4294966784  ;;  %s326_s23 = sshll.u32 %s545_s12, 7  ;;  %v166_v0 = vlaneseq  ;;  %v173_v6 = vld [vmem:[%s136_s15 + $0x10] sm:$0xff]  ;;  %v171_v7 = vld [vmem:[%s136_s15] sm:$0xff]  ;;  %vm162_vm1 = vcmask 123904   ;;  %v559_v15 = vmov 0.0  }
  0x34   : > { %v168_v1 = vstv %s326_s23  ;;  %v174_v8 = vld [vmem:[%s136_s15 + $0x18] sm:$0xff]  ;;  %v172_v11 = vld [vmem:[%s136_s15 + $0x8] sm:$0xff]  ;;  %163 = vst.msk [vmem:[#allocation2] sm:$0x3] %vm162_vm1, %v559_v15  ;;  %vm203_vm2 = vcmask 130112   ;;  %vm214_vm3 = vcmask 1041409  }
  0x35   : > { %v167_v2 = vand.u32 127, %v166_v0  ;;  %v195_v3 = vshrl.u32 %v166_v0, 7  ;;  %s152_s22 = sand.u32 1, %s525_s7   ;;  %s328_s18 = sshll.u32 %s545_s12, 5 }
  0x36   : > { %s325_s9 = sshll.u32 %s152_s22, 1  ;;  %s694_s25 = scalar_lea.hbm %s746_s1, %s328_s18 }
  0x37   : > { %v169_v4 = vadd.s32 %v168_v1, %v167_v2  ;;  %v196_v5 = vsub.s32 %v167_v2, %v195_v3  ;;  %v198_v14 = vadd.s32 4294967288, %v167_v2  ;;  %s154_s16 = scalar_lea.vmem [#allocation6], %s325_s9  ;;  %s226_s20 = scalar_lea.sflag [#allocation5], %s152_s22 }
  0x38   : > { %s239_s21 = sshll.u32 %s154_s16, 4  ;;  %s560_s2 = smov [#allocation6]   ;;  %s240_s21 = int_to_ptr.vmem [resolvable:$true] %s239_s21 }
  0x39   : > { %vm170_vm0 = vcmp.lt.s32.totalorder %v169_v4, 256  ;;  %v201_v16 = vsub.s32 %v198_v14, %v195_v3  ;;  %s449_s30 = scalar_lea.vmem %s240_s21, 32  ;;  %s453_s3 = sshll.u32 %s560_s2, 4  ;;  %s454_s3 = int_to_ptr.vmem [resolvable:$false] %s453_s3 }
  0x3a   : > { %v179_v9 = vsel %vm170_vm0, %v173_v6, 0.0  ;;  %v177_v10 = vsel %vm170_vm0, %v171_v7, 0.0  ;;  %v180_v12 = vsel %vm170_vm0, %v174_v8, 0.0  ;;  %v178_v13 = vsel %vm170_vm0, %v172_v11, 0.0  ;;  %p450_p8 = scmp.ne.s32.totalorder %s240_s21, %s449_s30  ;;  %s455_s12 = scalar_lea.vmem %s454_s3, 64 }
  0x3b   : > { %186 = vadd.xlane.f32.xlu1 %v179_v9  ;;  %182 = vadd.xlane.f32.xlu0 %v177_v10  ;;  %v181_v25 = vld [vmem:[#allocation2] sm:$0x3]  ;;  %p456_p7 = scmp.lt.s32.totalorder %s240_s21, %s454_s3  ;;  %p457_p10 = scmp.lt.s32.totalorder %s455_s12, %s449_s30 }
  0x3c   : > { %p451_p2 = pnand %p450_p8, %p652_p1 }
  0x3d   : > { %p458_p11 = por %p457_p10, %p456_p7 }
  0x3e   : > { %p452_p5 = pneg %p451_p2 }
  0x3f   : > { %188 = vadd.xlane.f32.xlu1 %v180_v12  ;;  %184 = vadd.xlane.f32.xlu0 %v178_v13 }
  0x40   : > { %p459_p12 = pnand %p458_p11, %p452_p5 }
  0xc4   : > { %v187_v17 = vpop.xlane.xlu1 %186  ;;  %v183_v18 = vpop.xlane.xlu0 %182 }
  0xc5   : > { %v208_v21 = vrot.slane %v187_v17, %v196_v5  ;;  %v197_v22 = vrot.slane %v183_v18, %v196_v5 }
  0xc8   : > { %v189_v19 = vpop.xlane.xlu1 %188  ;;  %v185_v20 = vpop.xlane.xlu0 %184 }
  0xc9   : > { %v212_v23 = vrot.slane %v189_v19, %v201_v16  ;;  %v202_v24 = vrot.slane %v185_v20, %v201_v16 }
  0xcb   : > { %v213_v26 = vsel %vm203_vm2, %v212_v23, %v208_v21  ;;  %v204_v27 = vsel %vm203_vm2, %v202_v24, %v197_v22 }
  0xcc   : > { %v215_v28 = vsel %vm214_vm3, %v213_v26, %v204_v27 }
  0xcd   : > { %v217_v29 = vadd.f32 %v215_v28, %v181_v25 }
  0xcf   : > { %219 = vst.msk [vmem:[#allocation2] sm:$0x3] %vm162_vm1, %v217_v29 }
  0xd6   : > { %v223_v30 = vld [vmem:[#allocation2] sm:$0x3] }
  0xd7   : > { %224 = vst.msk [vmem:[%s154_s16] sm:$0x3] %vm162_vm1, %v223_v30 }
  0xd8   : > { %462 = shalt.err (!%p459_p12)
}
  0xd9   : > { %s463_s4 = scalar_lea.hbm %s694_s25, 32  ;;  %s467_s23 = scalar_lea.hbm %s746_s1, 64 }
  0xda   : > { %p464_p13 = scmp.ne.s32.totalorder %s694_s25, %s463_s4  ;;  %p468_p4 = scmp.lt.s32.totalorder %s694_s25, %s746_s1 }
  0xdb   : > { %p469_p9 = scmp.lt.s32.totalorder %s467_s23, %s463_s4 }
  0xdc   : > { %p465_p0 = pnand %p464_p13, %p652_p1 }
  0xdd   : > { %p470_p8 = por %p469_p9, %p468_p4 }
  0xde   : > { %p466_p6 = pneg %p465_p0 }
  0xe0   : > { %p471_p2 = pnand %p470_p8, %p466_p6 }
  0xe2   : > { %474 = shalt.err (!%p471_p2)
}
  0xe3   : > { %333 = dma.vmem_to_hbm [thread:$0]  (%p652_p1), %s240_s21, 32, %s694_s25, %s226_s20  }
  0xe4 PF: > { %s251_s18 = sand.u32 1, %s521_s6   ;;  %p752_p5 = scmp.ge.s32.totalorder %s553_s14, 2 }
  0xe5   : > { %s252_s16 = scalar_lea.sflag [#allocation5], %s251_s18 }
  0xe6   : > { %p340_p7 = pnand %p752_p5, %p657_p3 }
  0xe8   : > { %p341_p10 = pneg %p340_p7 }
  0xea   : > { %516 = dma.done.wait (%p341_p10), %s252_s16, 32  }
  0xeb   : > { %518 = vsyncadd (%p341_p10), %s252_s16, 4294967264  ;;  %s17_s14 = sadd.s32 1, %s553_s14   ;;  %s753_s6 = smov %s525_s7 }
  0xec   : > { %p14_p11 = scmp.ge.s32.totalorder %s17_s14, 4   ;;  %s754_s7 = smov %s529_s8 }
  0xed   : > { %s755_s8 = smov %s643_s26  ;;  %s756_s9 = smov %s537_s10 }
  0xee   : > { %s757_s10 = smov %s541_s11  ;;  %s758_s11 = smov %s646_s27 }
  0xef   : > { %s759_s12 = smov %s549_s13  ;;  %s760_s13 = smov %s762_s17 }
  0xf0   :  { %16 = sbr.rel (!%p14_p11) target bundleno = 8 (0x8), region = 77 }
  0xf5   :  { %257 = vsyncpa [#allocation4], 1 }
  0xf6   :  { %259 = vsyncpa [#allocation4 + $0x1], 1 }
  0xf7   :  { %260 = vsyncpa [#allocation5], 1 }
  0xf8   :  { %262 = vsyncpa [#allocation5 + $0x1], 1 }

</bundles_post_ra>
